<compile_context>
chip_gen: v5e
topology: v5e:2x2
jax: 0.10.0
libtpu: 0.0.40
codegen_flags: <defaults>
</compile_context>

<pallas_src>
import functools

import jax
import jax.numpy as jnp
from jax import lax
from jax.experimental import pallas as pl
from jax.experimental.pallas import tpu as pltpu


def _ce_kernel(logits_ref, label_ref, loss_ref,
               m_ref, l_ref, corr_ref, *, c_total, tc, mask_cols):
    """Online-softmax cross-entropy over one (TB, TC) logits tile."""
    k = pl.program_id(1)
    nk = pl.num_programs(1)

    # --- init per-B-tile accumulators on the first C tile -------------------
    @pl.when(k == 0)
    def _():
        m_ref[...] = jnp.full(m_ref.shape, -jnp.inf, dtype=jnp.float32)
        l_ref[...] = jnp.zeros(l_ref.shape, dtype=jnp.float32)
        corr_ref[...] = jnp.zeros(corr_ref.shape, dtype=jnp.float32)

    x = logits_ref[...].astype(jnp.float32)          # (TB, TC) f32 compute
    lbl = label_ref[...]                             # (TB, 1)  int32

    # local (in-tile) column index; compare against offset-adjusted scalars
    col_local = lax.broadcasted_iota(jnp.int32, x.shape, 1)
    col_off = k * tc

    # mask padded columns of a partial last C tile (trace-time decision)
    if mask_cols:
        valid = c_total - col_off                    # traced scalar
        x = jnp.where(col_local < valid, x, -jnp.inf)

    # --- online logsumexp update --------------------------------------------
    m_prev = m_ref[...]
    m_new = jnp.maximum(m_prev, jnp.max(x, axis=-1, keepdims=True))
    alpha = jnp.exp(m_prev - m_new)                  # (TB,1) - cheap EUP work
    p = jnp.exp(x - m_new)                           # (TB,TC)
    l_ref[...] = alpha * l_ref[...] + jnp.sum(p, axis=-1, keepdims=True)
    m_ref[...] = m_new

    # --- accumulate the correct-class logit (local iota == local label) -----
    corr_ref[...] += jnp.sum(jnp.where(col_local == (lbl - col_off), x, 0.0),
                             axis=-1, keepdims=True)

    # --- finalize on the last C tile -----------------------------------------
    @pl.when(k == nk - 1)
    def _():
        loss_ref[...] = m_ref[...] + jnp.log(l_ref[...]) - corr_ref[...]


def _round_up(x, m):
    return ((x + m - 1) // m) * m


def _choose_tiles(B, C, itemsize):
    """Largest lane-dense tiles that keep a double-buffered logits tile small."""
    tb = min(256, _round_up(B, 8))                 # sublane-aligned batch tile
    budget = 4 * 1024 * 1024                       # bytes per logits buffer
    max_tc = max(128, budget // (tb * itemsize))
    if C <= max_tc:
        tc = C                                     # full class dim (always legal)
    else:
        tc = (max_tc // 128) * 128                 # lane-aligned multiple of 128
    return tb, tc


def retrieval_loss(global_logits, label, *, tb=None, tc=None):
    """JAX/Pallas equivalent of RetrievalLoss().forward(global_logits, label).

    global_logits: (B, C) float array (f32 or bf16; streamed in native dtype)
    label:         (B,)   integer class indices
    returns scalar float32 loss (mean cross-entropy over the batch).
    """
    B, C = global_logits.shape
    itemsize = jnp.dtype(global_logits.dtype).itemsize

    auto_tb, auto_tc = _choose_tiles(B, C, itemsize)
    tb = auto_tb if tb is None else tb
    tc = auto_tc if tc is None else tc

    nb = pl.cdiv(B, tb)
    nk = pl.cdiv(C, tc)

    lbl2d = label.reshape(-1).astype(jnp.int32).reshape(B, 1)

    kernel = functools.partial(_ce_kernel,
                               c_total=C,
                               tc=tc,
                               mask_cols=(C % tc != 0))

    per_row = pl.pallas_call(
        kernel,
        out_shape=jax.ShapeDtypeStruct((B, 1), jnp.float32),
        grid_spec=pltpu.PrefetchScalarGridSpec(
            num_scalar_prefetch=0,
            grid=(nb, nk),
            in_specs=[
                # logits tile: streamed over both grid axes
                pl.BlockSpec((tb, tc), lambda i, k: (i, k)),
                # label tile: constant over k -> stays resident across the C loop
                pl.BlockSpec((tb, 1), lambda i, k: (i, 0)),
            ],
            out_specs=pl.BlockSpec((tb, 1), lambda i, k: (i, 0)),
            scratch_shapes=[
                pltpu.VMEM((tb, 1), jnp.float32),   # running max m
                pltpu.VMEM((tb, 1), jnp.float32),   # running sum-exp l
                pltpu.VMEM((tb, 1), jnp.float32),   # correct-class logit
            ],
        ),
        compiler_params=pltpu.CompilerParams(
            dimension_semantics=("parallel", "arbitrary"),
            vmem_limit_bytes=32 * 1024 * 1024,
        ),
        cost_estimate=pl.CostEstimate(
            flops=int(5 * B * C),
            transcendentals=int(B * C),
            bytes_accessed=int(B * C * itemsize + 8 * B),
        ),
    )(global_logits, lbl2d)

    # final (tiny) batch-mean reduction in the wrapper keeps B tiles independent
    return jnp.mean(per_row)


if __name__ == "__main__":
    key = jax.random.PRNGKey(0)
    k1, k2, k3, k4 = jax.random.split(key, 4)

    def ref_loss(logits, lbl):
        x = logits.astype(jnp.float32)
        lse = jax.nn.logsumexp(x, axis=-1)
        corr = jnp.take_along_axis(x, lbl[:, None].astype(jnp.int32), axis=-1)[:, 0]
        return jnp.mean(lse - corr)

    # 1) small f32 case (single tile)
    B, C = 8, 32
    logits = jax.random.normal(k1, (B, C), dtype=jnp.float32)
    label = jax.random.randint(k2, (B,), 0, C, dtype=jnp.int32)
    loss = retrieval_loss(logits, label)
    jax.block_until_ready(loss)
    assert jnp.allclose(loss, ref_loss(logits, label), atol=1e-5, rtol=1e-5), (
        loss, ref_loss(logits, label))

    # 2) tiled case: partial B and C tiles, online logsumexp + column masking
    B2, C2 = 24, 200
    logits2 = jax.random.normal(k3, (B2, C2), dtype=jnp.float32)
    label2 = jax.random.randint(k4, (B2,), 0, C2, dtype=jnp.int32)
    loss2 = retrieval_loss(logits2, label2, tb=16, tc=128)
    jax.block_until_ready(loss2)
    assert jnp.allclose(loss2, ref_loss(logits2, label2), atol=1e-4, rtol=1e-4), (
        loss2, ref_loss(logits2, label2))

    # 3) bf16 logits streamed natively (no wrapper-side f32 copy)
    logits3 = logits2.astype(jnp.bfloat16)
    loss3 = retrieval_loss(logits3, label2, tb=16, tc=128)
    jax.block_until_ready(loss3)
    assert jnp.allclose(loss3, ref_loss(logits3, label2), atol=2e-2, rtol=2e-2), (
        loss3, ref_loss(logits3, label2))

    print("KERNEL_OK")
</pallas_src>

<mosaic_0001>
module attributes {stable_mosaic.version = 11 : i64} {
  func.func @_ce_kernel(%arg0: i32, %arg1: i32, %arg2: memref<8x32xf32, #tpu.memory_space<vmem>>, %arg3: memref<8x1xi32, #tpu.memory_space<vmem>>, %arg4: memref<8x1xf32, #tpu.memory_space<vmem>>, %arg5: memref<8x1xf32, #tpu.memory_space<vmem>>, %arg6: memref<8x1xf32, #tpu.memory_space<vmem>>, %arg7: memref<8x1xf32, #tpu.memory_space<vmem>>) attributes {dimension_semantics = [#tpu.dimension_semantics<parallel>, #tpu.dimension_semantics<arbitrary>], iteration_bounds = array<i64: 1, 1>, scalar_prefetch = 0 : i64, scratch_operands = 3 : i64, tpu.core_type = #tpu.core_type<tc>, window_params = [{transform_indices = @transform_0, window_bounds = array<i64: 8, 32>}, {transform_indices = @transform_1, window_bounds = array<i64: 8, 1>}, {transform_indices = @transform_2, window_bounds = array<i64: 8, 1>}]} {
    %c0_i32 = arith.constant 0 : i32
    %0 = arith.cmpi eq, %arg1, %c0_i32 : i32
    %1 = arith.extui %0 : i1 to i32
    %c0_i32_0 = arith.constant 0 : i32
    %2 = arith.cmpi ne, %1, %c0_i32_0 : i32
    scf.if %2 {
      %cst_21 = arith.constant 0xFF800000 : f32
      %37 = vector.broadcast %cst_21 : f32 to vector<8x1xf32>
      %c0_22 = arith.constant 0 : index
      %c0_23 = arith.constant 0 : index
      %38 = vector.load %arg5[%c0_22, %c0_23] : memref<8x1xf32, #tpu.memory_space<vmem>>, vector<8x1xf32>
      tpu.vector_store %arg5[%c0_22, %c0_23], %37 {strides = array<i32>} : memref<8x1xf32, #tpu.memory_space<vmem>>, vector<8x1xf32>,
      %cst_24 = arith.constant 0.000000e+00 : f32
      %39 = vector.broadcast %cst_24 : f32 to vector<8x1xf32>
      %c0_25 = arith.constant 0 : index
      %c0_26 = arith.constant 0 : index
      %40 = vector.load %arg6[%c0_25, %c0_26] : memref<8x1xf32, #tpu.memory_space<vmem>>, vector<8x1xf32>
      tpu.vector_store %arg6[%c0_25, %c0_26], %39 {strides = array<i32>} : memref<8x1xf32, #tpu.memory_space<vmem>>, vector<8x1xf32>,
      %cst_27 = arith.constant 0.000000e+00 : f32
      %41 = vector.broadcast %cst_27 : f32 to vector<8x1xf32>
      %c0_28 = arith.constant 0 : index
      %c0_29 = arith.constant 0 : index
      %42 = vector.load %arg7[%c0_28, %c0_29] : memref<8x1xf32, #tpu.memory_space<vmem>>, vector<8x1xf32>
      tpu.vector_store %arg7[%c0_28, %c0_29], %41 {strides = array<i32>} : memref<8x1xf32, #tpu.memory_space<vmem>>, vector<8x1xf32>,
    } else {
    }
    %c0 = arith.constant 0 : index
    %c0_1 = arith.constant 0 : index
    %3 = vector.load %arg2[%c0, %c0_1] : memref<8x32xf32, #tpu.memory_space<vmem>>, vector<8x32xf32>
    %c0_2 = arith.constant 0 : index
    %c0_3 = arith.constant 0 : index
    %4 = vector.load %arg3[%c0_2, %c0_3] : memref<8x1xi32, #tpu.memory_space<vmem>>, vector<8x1xi32>
    %5 = tpu.iota {dimensions = array<i32: 1>} : vector<8x32xi32>
    %c32_i32 = arith.constant 32 : i32
    %6 = arith.muli %arg1, %c32_i32 : i32
    %c0_4 = arith.constant 0 : index
    %c0_5 = arith.constant 0 : index
    %7 = vector.load %arg5[%c0_4, %c0_5] : memref<8x1xf32, #tpu.memory_space<vmem>>, vector<8x1xf32>
    %cst = arith.constant dense<0xFF800000> : vector<8xf32>
    %8 = vector.multi_reduction <maximumf>, %3, %cst [1] : vector<8x32xf32> to vector<8xf32>
    %9 = vector.shape_cast %8 : vector<8xf32> to vector<8x1xf32>
    %10 = arith.maximumf %7, %9 : vector<8x1xf32>
    %11 = arith.subf %7, %10 : vector<8x1xf32>
    %12 = math.exp %11 : vector<8x1xf32>
    %13 = vector.broadcast %10 : vector<8x1xf32> to vector<8x32xf32>
    %14 = arith.subf %3, %13 : vector<8x32xf32>
    %15 = math.exp %14 : vector<8x32xf32>
    %c0_6 = arith.constant 0 : index
    %c0_7 = arith.constant 0 : index
    %16 = vector.load %arg6[%c0_6, %c0_7] : memref<8x1xf32, #tpu.memory_space<vmem>>, vector<8x1xf32>
    %17 = arith.mulf %12, %16 : vector<8x1xf32>
    %cst_8 = arith.constant dense<0.000000e+00> : vector<8xf32>
    %18 = vector.multi_reduction <add>, %15, %cst_8 [1] : vector<8x32xf32> to vector<8xf32>
    %19 = vector.shape_cast %18 : vector<8xf32> to vector<8x1xf32>
    %20 = arith.addf %17, %19 : vector<8x1xf32>
    %c0_9 = arith.constant 0 : index
    %c0_10 = arith.constant 0 : index
    %21 = vector.load %arg6[%c0_9, %c0_10] : memref<8x1xf32, #tpu.memory_space<vmem>>, vector<8x1xf32>
    tpu.vector_store %arg6[%c0_9, %c0_10], %20 {strides = array<i32>} : memref<8x1xf32, #tpu.memory_space<vmem>>, vector<8x1xf32>,
    %c0_11 = arith.constant 0 : index
    %c0_12 = arith.constant 0 : index
    %22 = vector.load %arg5[%c0_11, %c0_12] : memref<8x1xf32, #tpu.memory_space<vmem>>, vector<8x1xf32>
    tpu.vector_store %arg5[%c0_11, %c0_12], %10 {strides = array<i32>} : memref<8x1xf32, #tpu.memory_space<vmem>>, vector<8x1xf32>,
    %c0_13 = arith.constant 0 : index
    %c0_14 = arith.constant 0 : index
    %23 = vector.load %arg7[%c0_13, %c0_14] : memref<8x1xf32, #tpu.memory_space<vmem>>, vector<8x1xf32>
    %24 = vector.broadcast %6 : i32 to vector<8x1xi32>
    %25 = arith.subi %4, %24 : vector<8x1xi32>
    %26 = vector.broadcast %25 : vector<8x1xi32> to vector<8x32xi32>
    %27 = arith.cmpi eq, %5, %26 : vector<8x32xi32>
    %cst_15 = arith.constant 0.000000e+00 : f32
    %28 = vector.broadcast %cst_15 : f32 to vector<8x32xf32>
    %29 = arith.select %27, %3, %28 : vector<8x32xi1>, vector<8x32xf32>
    %cst_16 = arith.constant dense<0.000000e+00> : vector<8xf32>
    %30 = vector.multi_reduction <add>, %29, %cst_16 [1] : vector<8x32xf32> to vector<8xf32>
    %31 = vector.shape_cast %30 : vector<8xf32> to vector<8x1xf32>
    %32 = arith.addf %23, %31 : vector<8x1xf32>
    %c0_17 = arith.constant 0 : index
    %c0_18 = arith.constant 0 : index
    %33 = vector.load %arg7[%c0_17, %c0_18] : memref<8x1xf32, #tpu.memory_space<vmem>>, vector<8x1xf32>
    tpu.vector_store %arg7[%c0_17, %c0_18], %32 {strides = array<i32>} : memref<8x1xf32, #tpu.memory_space<vmem>>, vector<8x1xf32>,
    %c0_i32_19 = arith.constant 0 : i32
    %34 = arith.cmpi eq, %arg1, %c0_i32_19 : i32
    %35 = arith.extui %34 : i1 to i32
    %c0_i32_20 = arith.constant 0 : i32
    %36 = arith.cmpi ne, %35, %c0_i32_20 : i32
    scf.if %36 {
      %c0_21 = arith.constant 0 : index
      %c0_22 = arith.constant 0 : index
      %37 = vector.load %arg5[%c0_21, %c0_22] : memref<8x1xf32, #tpu.memory_space<vmem>>, vector<8x1xf32>
      %c0_23 = arith.constant 0 : index
      %c0_24 = arith.constant 0 : index
      %38 = vector.load %arg6[%c0_23, %c0_24] : memref<8x1xf32, #tpu.memory_space<vmem>>, vector<8x1xf32>
      %39 = math.log %38 : vector<8x1xf32>
      %40 = arith.addf %37, %39 : vector<8x1xf32>
      %c0_25 = arith.constant 0 : index
      %c0_26 = arith.constant 0 : index
      %41 = vector.load %arg7[%c0_25, %c0_26] : memref<8x1xf32, #tpu.memory_space<vmem>>, vector<8x1xf32>
      %42 = arith.subf %40, %41 : vector<8x1xf32>
      %c0_27 = arith.constant 0 : index
      %c0_28 = arith.constant 0 : index
      %43 = vector.load %arg4[%c0_27, %c0_28] : memref<8x1xf32, #tpu.memory_space<vmem>>, vector<8x1xf32>
      tpu.vector_store %arg4[%c0_27, %c0_28], %42 {strides = array<i32>} : memref<8x1xf32, #tpu.memory_space<vmem>>, vector<8x1xf32>,
    } else {
    }
    return
  }
  func.func @transform_0(%arg0: i32, %arg1: i32) -> (i32, i32) {
    %c0_i32 = arith.constant 0 : i32
    return %arg0, %arg1 : i32, i32
  }
  func.func @transform_1(%arg0: i32, %arg1: i32) -> (i32, i32) {
    %c0_i32 = arith.constant 0 : i32
    %c0_i32_0 = arith.constant 0 : i32
    return %arg0, %c0_i32 : i32, i32
  }
  func.func @transform_2(%arg0: i32, %arg1: i32) -> (i32, i32) {
    %c0_i32 = arith.constant 0 : i32
    %c0_i32_0 = arith.constant 0 : i32
    return %arg0, %c0_i32 : i32, i32
  }
}

</mosaic_0001>

<bundles_post_ra>
// kernel: tpu_custom_call.1
= control target key start
LH: loop header
LB: loop body
LE: loop exit
PB: predicated region body
PF: predicated region fallthrough
CT: control target
= control target key end

     0   :  { %vm25_vm0 = vcmask 261120   ;;  %vm15_vm1 = vcmask 7168   ;;  %v89_v1 = vmov -inf   ;;  %v90_v3 = vmov 0   ;;  %s126_s0 = inlined_call_operand.vmem [shape: f32[8,32], index: 0, kind: input, shape index: {}]   ;;  %s127_s1 = inlined_call_operand.vmem [shape: s32[8,1], index: 1, kind: input, shape index: {}]   ;;  %s128_s2 = inlined_call_operand.vmem [shape: f32[8,1], index: 2, kind: output, shape index: {}]  }
   0x1   :  { %v19_v0 = vld [vmem:[%s126_s0] sm:$0xff]  ;;  %16 = vst.msk [vmem:[#allocation2] sm:$0xff] %vm15_vm1, %v89_v1  ;;  %81 = vset.pattern.permute.xlu0 %v90_v3  ;;  %82 = vset.pattern.permute.xlu1 %v90_v3  ;;  %v91_v4 = vmov 0.0   ;;  %v21_v10 = vlaneseq }
   0x2   :  { %v26_v2 = vsel %vm25_vm0, %v19_v0, -inf  ;;  %17 = vst.msk [vmem:[#allocation3] sm:$0xff] %vm15_vm1, %v91_v4  ;;  %v20_v5 = vld [vmem:[%s127_s1] sm:$0xff] }
   0x3   :  { %27 = vmax.xlane.f32.xlu0 %v26_v2  ;;  %18 = vst.msk [vmem:[#allocation4] sm:$0xff] %vm15_vm1, %v91_v4  ;;  %54 = vperm.xlu1 %82, %v20_v5   ;;  %v22_v12 = vand.u32 127, %v21_v10 }
   0x8   :  { %v24_v6 = vld [vmem:[#allocation2] sm:$0xff] }
   0x9   :  { %v41_v25 = vld [vmem:[#allocation3] sm:$0xff] }
   0xa   :  { %v50_v20 = vld [vmem:[#allocation4] sm:$0xff] }
  0x75   :  { %v55_v11 = vpop.permute.xlu1 %54 }
  0x76   :  { %v28_v7 = vpop.xlane.xlu0 %27  ;;  %vm56_vm2 = vcmp.eq.s32.totalorder %v22_v12, %v55_v11 }
  0x77   :  { %v29_v8 = vmax.f32 %v24_v6, %v28_v7  ;;  %v57_v13 = vsel %vm56_vm2, %v19_v0, 0.0 }
  0x78   :  { %v58_v14 = vsel %vm25_vm0, %v57_v13, 0.0 }
  0x79   :  { %v30_v9 = vsub.f32 %v24_v6, %v29_v8  ;;  %49 = vst.msk [vmem:[#allocation2] sm:$0xff] %vm15_vm1, %v29_v8  ;;  %35 = vperm.xlu0 %81, %v29_v8   ;;  %59 = vadd.xlane.f32.xlu2 %v58_v14 }
  0x7b   :  { %v31_v23 = vmul.f32 1.442695, %v30_v9 }
  0x80   :  { %v66_v32 = vld [vmem:[#allocation2] sm:$0xff] }
  0xeb   :  { %v36_v15 = vpop.permute.xlu0 %35 }
  0xec   :  { %v38_v16 = vsub.f32 %v19_v0, %v36_v15  ;;  %v60_v21 = vpop.xlane.xlu2 %59 }
  0xed   :  { %v61_v22 = vadd.f32 %v60_v21, %v50_v20 }
  0xee   :  { %v39_v17 = vmul.f32 1.442695, %v38_v16 }
  0xef   :  { %62 = vst.msk [vmem:[#allocation4] sm:$0xff] %vm15_vm1, %v61_v22 }
  0xf0   :  { %83 = vpow2.f32 %v39_v17 }
  0xf1   :  { %85 = vpow2.f32 %v31_v23 }
  0xf6   :  { %v84_v18 = vpop.eup %83  ;;  %v71_v33 = vld [vmem:[#allocation4] sm:$0xff] }
  0xf7   :  { %v43_v19 = vsel %vm25_vm0, %v84_v18, 0.0  ;;  %v86_v24 = vpop.eup %85 }
  0xf8   :  { %44 = vadd.xlane.f32.xlu1 %v43_v19  ;;  %v42_v26 = vmul.f32 %v86_v24, %v41_v25 }
 0x16b   :  { %v45_v27 = vpop.xlane.xlu1 %44 }
 0x16c   :  { %v46_v28 = vadd.f32 %v45_v27, %v42_v26 }
 0x16e   :  { %48 = vst.msk [vmem:[#allocation3] sm:$0xff] %vm15_vm1, %v46_v28 }
 0x175   :  { %v67_v29 = vld [vmem:[#allocation3] sm:$0xff] }
 0x176   :  { %87 = vlog2.f32 %v67_v29 }
 0x17c   :  { %v88_v30 = vpop.eup %87 }
 0x17d   :  { %v69_v31 = vmul.f32 0.6931472, %v88_v30 }
 0x17f   :  { %v70_v34 = vadd.f32 %v69_v31, %v66_v32 }
 0x181   :  { %v72_v35 = vsub.f32 %v70_v34, %v71_v33 }
 0x183   :  { %73 = vst.msk [vmem:[%s128_s2] sm:$0xff] %vm15_vm1, %v72_v35 }

</bundles_post_ra>
